<compile_context>
chip_gen: v7x
topology: tpu7x:2x2x1
jax: 0.10.0
libtpu: 0.0.40
codegen_flags: <defaults>
</compile_context>

<pallas_src>
import functools
import jax
import jax.numpy as jnp
from jax.experimental import pallas as pl
from jax.experimental.pallas import tpu as pltpu


def _round_up(x, m):
    return ((x + m - 1) // m) * m


def _cdiv(a, b):
    return -(-a // b)


def _physical_vmem_bytes():
    # Conservative default (v7x per-TC VMEM) if the query is unavailable.
    try:
        return int(pltpu.get_tpu_info().vmem_capacity_bytes)
    except Exception:
        return 64 << 20


def _invariant_spec(shape, index_map):
    """BlockSpec for a grid-invariant operand: single buffer (no double-buffer)."""
    try:
        return pl.BlockSpec(shape, index_map, pipeline_mode=pl.Buffered(1))
    except (AttributeError, TypeError):
        # Older jax without pipeline_mode / Buffered: fall back to default.
        return pl.BlockSpec(shape, index_map)


def _apply_act(h, act_func):
    # Dropout(p=0.1) of the module: identity at inference time.
    # TODO(synk): training-mode dropout (pltpu.prng_seed + prng_random_bits mask).
    if act_func == "relu":
        return jnp.maximum(h, 0.0)
    if act_func == "gelu":
        return jax.nn.gelu(h)
    # act_func=None -> build_activation(None) returns None -> no activation.
    return h


# --------------------------------------------------------------------------- #
# Kernels
# --------------------------------------------------------------------------- #
def _mlp_kernel_resident(x_ref, w1_ref, b1_ref, w2_ref, b2_ref, o_ref, *, act_func):
    """Both weight matrices resident in VMEM; one grid axis over rows."""
    h = jnp.dot(x_ref[...], w1_ref[...], preferred_element_type=jnp.float32)
    h = h + b1_ref[...].astype(jnp.float32)
    h = _apply_act(h, act_func)
    out = jnp.dot(h.astype(w2_ref.dtype), w2_ref[...],
                  preferred_element_type=jnp.float32)
    out = out + b2_ref[...].astype(jnp.float32)
    o_ref[...] = out.astype(o_ref.dtype)


def _mlp_kernel_ktiled(x_ref, w1_ref, b1_ref, w2_ref, b2_ref, o_ref, acc_ref,
                       *, act_func):
    """Hidden-dimension tiled path: grid=(rows, hid tiles), f32 accumulator.

    Valid because the activation is elementwise over the hidden dim, so it can
    be applied per hidden tile before the second matmul.
    """
    k = pl.program_id(1)

    @pl.when(k == 0)
    def _():
        acc_ref[...] = jnp.zeros_like(acc_ref)

    h = jnp.dot(x_ref[...], w1_ref[...], preferred_element_type=jnp.float32)
    h = h + b1_ref[...].astype(jnp.float32)
    h = _apply_act(h, act_func)
    acc_ref[...] += jnp.dot(h.astype(w2_ref.dtype), w2_ref[...],
                            preferred_element_type=jnp.float32)

    @pl.when(k == pl.num_programs(1) - 1)
    def _():
        o_ref[...] = (acc_ref[...] + b2_ref[...].astype(jnp.float32)).astype(o_ref.dtype)


# --------------------------------------------------------------------------- #
# Wrapper
# --------------------------------------------------------------------------- #
def prepare_mlp_params(w1, b1, w2, b2, *, compute_dtype=None):
    """Zero-pad (to 128-lane multiples) and cast weights ONCE at init time.

    w1: (in_features, hidden)   b1: (hidden,)      [pre-transposed vs torch]
    w2: (hidden, out_features)  b2: (out_features,)
    The returned dict can be reused for every forward call, so the pad copies
    stay out of the per-step hot path.
    """
    in_f, hid = w1.shape
    out_f = w2.shape[1]
    cd = jnp.dtype(compute_dtype) if compute_dtype is not None else jnp.dtype(w1.dtype)
    in_p, hid_p, out_p = (_round_up(d, 128) for d in (in_f, hid, out_f))

    def pad2(a, rows, cols):
        a = a.astype(cd)
        if a.shape == (rows, cols):
            return a
        return jnp.zeros((rows, cols), cd).at[:a.shape[0], :a.shape[1]].set(a)

    # Zero padding is exact: padded hidden columns give h = 0 + 0 bias,
    # act(0) = 0 for relu/gelu/None, and the matching (zero) w2 rows / padded
    # output columns contribute nothing.  Keep this invariant if new
    # activations are added.
    return dict(
        w1=pad2(w1, in_p, hid_p),
        b1=pad2(jnp.reshape(b1, (1, -1)), 1, hid_p),
        w2=pad2(w2, hid_p, out_p),
        b2=pad2(jnp.reshape(b2, (1, -1)), 1, out_p),
        dims=(in_f, hid, out_f),
        compute_dtype=cd,
    )


def mlp_forward_prepared(x, params, *, act_func=None, tm_max=256,
                         vmem_budget_bytes=None):
    """Fused MLP forward using pre-padded params from prepare_mlp_params."""
    in_f, hid, out_f = params["dims"]
    cd = params["compute_dtype"]
    w1_p, b1_p, w2_p, b2_p = params["w1"], params["b1"], params["w2"], params["b2"]

    N = x.shape[0]
    assert x.shape[1] == in_f, "x feature dim does not match params"
    out_dtype = x.dtype
    itemsize = jnp.dtype(cd).itemsize

    in_p, hid_p = w1_p.shape
    out_p = w2_p.shape[1]

    # ---- Balanced row tiles for ragged N (even megacore split, less waste) --
    n_steps = max(1, _cdiv(N, tm_max))
    tm = min(_round_up(_cdiv(N, n_steps), 8), _round_up(N, 8))
    n_p = _round_up(N, tm)
    grid_rows = n_p // tm

    # ---- x: cast + pad only when needed -------------------------------------
    if x.dtype != cd:
        x = x.astype(cd)
    if (n_p, in_p) == (N, in_f):
        x_p = x
    else:
        x_p = jnp.zeros((n_p, in_p), cd).at[:N, :in_f].set(x)

    # ---- VMEM budgeting (generation aware) ----------------------------------
    phys = _physical_vmem_bytes()
    budget = vmem_budget_bytes if vmem_budget_bytes is not None else (phys * 3) // 5

    vmem_resident = (
        2 * tm * in_p * itemsize                      # x tiles (double-buffered)
        + 2 * tm * out_p * itemsize                   # out tiles (double-buffered)
        + (in_p * hid_p + hid_p) * itemsize           # w1/b1 (single-buffered)
        + (hid_p * out_p + out_p) * itemsize          # w2/b2 (single-buffered)
        + tm * hid_p * 4 + tm * out_p * 4             # f32 intermediates
    )
    use_resident = vmem_resident <= budget

    if use_resident:
        tk = hid_p
        vmem_est = vmem_resident
    else:
        # Hid-tiled fallback: pick the largest tk (multiple of 128 dividing
        # hid_p) whose working set fits the budget; best effort tk=128.
        # TODO(synk): also tile in_p / out_p for extremely wide layers.
        def kt_vmem(tk_):
            return (2 * tm * in_p * itemsize
                    + 2 * tm * out_p * itemsize
                    + 2 * (in_p * tk_ + tk_) * itemsize      # w1/b1 blocks
                    + 2 * (tk_ * out_p + out_p) * itemsize   # w2/b2 blocks
                    + tm * out_p * 4                         # f32 accumulator
                    + tm * tk_ * 4)                          # f32 h tile
        nh = hid_p // 128
        tk = 128
        for nk in range(1, nh + 1):
            if nh % nk:
                continue
            cand = hid_p // nk
            if kt_vmem(cand) <= budget:
                tk = cand
                break
        vmem_est = kt_vmem(tk)

    cp_kwargs = {}
    if vmem_est > (16 << 20):   # above the smallest default scoped VMEM (v5e)
        cp_kwargs["vmem_limit_bytes"] = int(min(max(vmem_est * 5 // 4, 32 << 20),
                                                (phys * 85) // 100))

    # ---- Cost estimate -------------------------------------------------------
    flops = 2 * n_p * in_p * hid_p + 2 * n_p * hid_p * out_p
    transcendentals = n_p * hid_p if act_func == "gelu" else 0
    weight_bytes = (in_p * hid_p + hid_p + hid_p * out_p + out_p) * itemsize
    if use_resident:
        bytes_accessed = itemsize * (n_p * in_p + n_p * out_p) + weight_bytes
    else:
        bytes_accessed = itemsize * (n_p * in_p + n_p * out_p) + grid_rows * weight_bytes

    # ---- Build the pallas_call ----------------------------------------------
    if use_resident:
        kernel = functools.partial(_mlp_kernel_resident, act_func=act_func)
        grid = (grid_rows,)
        in_specs = [
            pl.BlockSpec((tm, in_p), lambda i: (i, 0)),                # x row tile
            _invariant_spec((in_p, hid_p), lambda i: (0, 0)),          # w1 resident
            _invariant_spec((1, hid_p), lambda i: (0, 0)),             # b1
            _invariant_spec((hid_p, out_p), lambda i: (0, 0)),         # w2 resident
            _invariant_spec((1, out_p), lambda i: (0, 0)),             # b2
        ]
        out_spec = pl.BlockSpec((tm, out_p), lambda i: (i, 0))
        scratch = []
        dims_sem = ("parallel",)
    else:
        kernel = functools.partial(_mlp_kernel_ktiled, act_func=act_func)
        grid = (grid_rows, hid_p // tk)
        in_specs = [
            pl.BlockSpec((tm, in_p), lambda i, k: (i, 0)),             # x row tile
            pl.BlockSpec((in_p, tk), lambda i, k: (0, k)),             # w1 hid tile
            pl.BlockSpec((1, tk), lambda i, k: (0, k)),                # b1 hid tile
            pl.BlockSpec((tk, out_p), lambda i, k: (k, 0)),            # w2 hid tile
            _invariant_spec((1, out_p), lambda i, k: (0, 0)),          # b2
        ]
        out_spec = pl.BlockSpec((tm, out_p), lambda i, k: (i, 0))      # const over k
        scratch = [pltpu.VMEM((tm, out_p), jnp.float32)]
        dims_sem = ("parallel", "arbitrary")

    out_padded = pl.pallas_call(
        kernel,
        out_shape=jax.ShapeDtypeStruct((n_p, out_p), out_dtype),
        grid_spec=pltpu.PrefetchScalarGridSpec(
            num_scalar_prefetch=0,
            grid=grid,
            in_specs=in_specs,
            out_specs=out_spec,
            scratch_shapes=scratch,
        ),
        compiler_params=pltpu.CompilerParams(dimension_semantics=dims_sem,
                                             **cp_kwargs),
        cost_estimate=pl.CostEstimate(flops=flops,
                                      transcendentals=transcendentals,
                                      bytes_accessed=bytes_accessed),
    )(x_p, w1_p, b1_p, w2_p, b2_p)

    if (n_p, out_p) == (N, out_f):
        return out_padded
    return out_padded[:N, :out_f]


def mlp_forward(x, w1, b1, w2, b2, *, act_func=None, tm_max=256,
                compute_dtype=None, vmem_budget_bytes=None):
    """Convenience wrapper: pads params then runs the fused forward.

    For repeated calls, call prepare_mlp_params once and use
    mlp_forward_prepared to keep the weight-padding copies out of the hot path.
    """
    params = prepare_mlp_params(w1, b1, w2, b2, compute_dtype=compute_dtype)
    return mlp_forward_prepared(x, params, act_func=act_func, tm_max=tm_max,
                                vmem_budget_bytes=vmem_budget_bytes)


# --------------------------------------------------------------------------- #
# Reference + tests
# --------------------------------------------------------------------------- #
def mlp_reference(x, w1, b1, w2, b2, act_func=None):
    h = x @ w1 + jnp.reshape(b1, (1, -1))
    if act_func == "relu":
        h = jnp.maximum(h, 0.0)
    elif act_func == "gelu":
        h = jax.nn.gelu(h)
    return h @ w2 + jnp.reshape(b2, (1, -1))


def _make_params(key, in_f, hid, out_f):
    k1, k2, k3, k4 = jax.random.split(key, 4)
    bound1 = 1.0 / (in_f ** 0.5)
    w1 = jax.random.uniform(k1, (in_f, hid), minval=-bound1, maxval=bound1,
                            dtype=jnp.float32)
    b1 = jax.random.uniform(k2, (hid,), minval=-bound1, maxval=bound1,
                            dtype=jnp.float32)
    bound2 = 1.0 / (hid ** 0.5)
    w2 = jax.random.uniform(k3, (hid, out_f), minval=-bound2, maxval=bound2,
                            dtype=jnp.float32)
    b2 = jax.random.uniform(k4, (out_f,), minval=-bound2, maxval=bound2,
                            dtype=jnp.float32)
    return w1, b1, w2, b2


if __name__ == "__main__":
    key = jax.random.PRNGKey(0)

    # --- Test 1: module config MLP(hidden=64, in=32, out=32), act=None,
    #             resident-weight path, grid of 1 ---------------------------
    N, in_f, hid, out_f = 8, 32, 64, 32
    kx, kp = jax.random.split(key)
    x = jax.random.normal(kx, (N, in_f), dtype=jnp.float32)
    w1, b1, w2, b2 = _make_params(kp, in_f, hid, out_f)

    out = mlp_forward(x, w1, b1, w2, b2, act_func=None)
    out = jax.block_until_ready(out)
    ref = mlp_reference(x, w1, b1, w2, b2, act_func=None)
    assert out.shape == (N, out_f)
    assert jnp.allclose(out, ref, atol=2e-5, rtol=2e-5), "mismatch (test 1)"

    # --- Test 2: ragged N=300, non-128 dims, gelu; balanced 2x152 row tiles -
    N2, in2, hid2, out2 = 300, 96, 192, 80
    kx2, kp2 = jax.random.split(jax.random.PRNGKey(1))
    x2 = jax.random.normal(kx2, (N2, in2), dtype=jnp.float32)
    p2 = _make_params(kp2, in2, hid2, out2)

    out2_ = mlp_forward(x2, *p2, act_func="gelu")
    out2_ = jax.block_until_ready(out2_)
    ref2 = mlp_reference(x2, *p2, act_func="gelu")
    assert out2_.shape == (N2, out2)
    assert jnp.allclose(out2_, ref2, atol=2e-5, rtol=2e-5), "mismatch (test 2)"

    # --- Test 3: force the hid-tiled fallback path (tiny budget) ------------
    N3, in3, hid3, out3 = 300, 96, 256, 80
    kx3, kp3 = jax.random.split(jax.random.PRNGKey(2))
    x3 = jax.random.normal(kx3, (N3, in3), dtype=jnp.float32)
    p3 = _make_params(kp3, in3, hid3, out3)

    out3_ = mlp_forward(x3, *p3, act_func="relu", vmem_budget_bytes=1)
    out3_ = jax.block_until_ready(out3_)
    ref3 = mlp_reference(x3, *p3, act_func="relu")
    assert out3_.shape == (N3, out3)
    assert jnp.allclose(out3_, ref3, atol=2e-5, rtol=2e-5), "mismatch (test 3)"

    print("KERNEL_OK")
</pallas_src>

<mosaic_0001>
module attributes {stable_mosaic.version = 11 : i64} {
  func.func @_mlp_kernel_resident(%arg0: i32, %arg1: memref<8x128xf32, #tpu.memory_space<vmem>>, %arg2: memref<128x128xf32, #tpu.memory_space<vmem>>, %arg3: memref<1x128xf32, #tpu.memory_space<vmem>>, %arg4: memref<128x128xf32, #tpu.memory_space<vmem>>, %arg5: memref<1x128xf32, #tpu.memory_space<vmem>>, %arg6: memref<8x128xf32, #tpu.memory_space<vmem>>) attributes {dimension_semantics = [#tpu.dimension_semantics<parallel>], iteration_bounds = array<i64: 1>, scalar_prefetch = 0 : i64, scratch_operands = 0 : i64, tpu.core_type = #tpu.core_type<tc>, window_params = [{transform_indices = @transform_0, window_bounds = array<i64: 8, 128>}, {pipeline_mode = #tpu.pipeline_mode<synchronous>, transform_indices = @transform_1, window_bounds = array<i64: 128, 128>}, {pipeline_mode = #tpu.pipeline_mode<synchronous>, transform_indices = @transform_2, window_bounds = array<i64: 1, 128>}, {pipeline_mode = #tpu.pipeline_mode<synchronous>, transform_indices = @transform_3, window_bounds = array<i64: 128, 128>}, {pipeline_mode = #tpu.pipeline_mode<synchronous>, transform_indices = @transform_4, window_bounds = array<i64: 1, 128>}, {transform_indices = @transform_5, window_bounds = array<i64: 8, 128>}]} {
    %c0 = arith.constant 0 : index
    %c0_0 = arith.constant 0 : index
    %0 = vector.load %arg1[%c0, %c0_0] : memref<8x128xf32, #tpu.memory_space<vmem>>, vector<8x128xf32>
    %c0_1 = arith.constant 0 : index
    %c0_2 = arith.constant 0 : index
    %1 = vector.load %arg2[%c0_1, %c0_2] : memref<128x128xf32, #tpu.memory_space<vmem>>, vector<128x128xf32>
    %cst = arith.constant dense<0.000000e+00> : vector<8x128xf32>
    %2 = tpu.matmul %0, %1, %cst {dimension_numbers = #tpu.dot_dimension_numbers<[1], [0], [0], [1], [0, 0, 1, 1], [], []>} : vector<8x128xf32>, vector<128x128xf32>, vector<8x128xf32> -> vector<8x128xf32>
    %c0_3 = arith.constant 0 : index
    %c0_4 = arith.constant 0 : index
    %3 = vector.load %arg3[%c0_3, %c0_4] : memref<1x128xf32, #tpu.memory_space<vmem>>, vector<1x128xf32>
    %4 = vector.broadcast %3 : vector<1x128xf32> to vector<8x128xf32>
    %5 = arith.addf %2, %4 : vector<8x128xf32>
    %c0_5 = arith.constant 0 : index
    %c0_6 = arith.constant 0 : index
    %6 = vector.load %arg4[%c0_5, %c0_6] : memref<128x128xf32, #tpu.memory_space<vmem>>, vector<128x128xf32>
    %cst_7 = arith.constant dense<0.000000e+00> : vector<8x128xf32>
    %7 = tpu.matmul %5, %6, %cst_7 {dimension_numbers = #tpu.dot_dimension_numbers<[1], [0], [0], [1], [0, 0, 1, 1], [], []>} : vector<8x128xf32>, vector<128x128xf32>, vector<8x128xf32> -> vector<8x128xf32>
    %c0_8 = arith.constant 0 : index
    %c0_9 = arith.constant 0 : index
    %8 = vector.load %arg5[%c0_8, %c0_9] : memref<1x128xf32, #tpu.memory_space<vmem>>, vector<1x128xf32>
    %9 = vector.broadcast %8 : vector<1x128xf32> to vector<8x128xf32>
    %10 = arith.addf %7, %9 : vector<8x128xf32>
    %c0_10 = arith.constant 0 : index
    %c0_11 = arith.constant 0 : index
    %11 = vector.load %arg6[%c0_10, %c0_11] : memref<8x128xf32, #tpu.memory_space<vmem>>, vector<8x128xf32>
    tpu.vector_store %arg6[%c0_10, %c0_11], %10 {strides = array<i32>} : memref<8x128xf32, #tpu.memory_space<vmem>>, vector<8x128xf32>,
    return
  }
  func.func @transform_0(%arg0: i32) -> (i32, i32) {
    %c0_i32 = arith.constant 0 : i32
    %c0_i32_0 = arith.constant 0 : i32
    return %arg0, %c0_i32 : i32, i32
  }
  func.func @transform_1(%arg0: i32) -> (i32, i32) {
    %c0_i32 = arith.constant 0 : i32
    %c0_i32_0 = arith.constant 0 : i32
    %c0_i32_1 = arith.constant 0 : i32
    return %c0_i32, %c0_i32_0 : i32, i32
  }
  func.func @transform_2(%arg0: i32) -> (i32, i32) {
    %c0_i32 = arith.constant 0 : i32
    %c0_i32_0 = arith.constant 0 : i32
    %c0_i32_1 = arith.constant 0 : i32
    return %c0_i32, %c0_i32_0 : i32, i32
  }
  func.func @transform_3(%arg0: i32) -> (i32, i32) {
    %c0_i32 = arith.constant 0 : i32
    %c0_i32_0 = arith.constant 0 : i32
    %c0_i32_1 = arith.constant 0 : i32
    return %c0_i32, %c0_i32_0 : i32, i32
  }
  func.func @transform_4(%arg0: i32) -> (i32, i32) {
    %c0_i32 = arith.constant 0 : i32
    %c0_i32_0 = arith.constant 0 : i32
    %c0_i32_1 = arith.constant 0 : i32
    return %c0_i32, %c0_i32_0 : i32, i32
  }
  func.func @transform_5(%arg0: i32) -> (i32, i32) {
    %c0_i32 = arith.constant 0 : i32
    %c0_i32_0 = arith.constant 0 : i32
    return %arg0, %c0_i32 : i32, i32
  }
}

</mosaic_0001>

<bundles_post_ra>
// kernel: tpu_custom_call.1
= control target key start
LH: loop header
LB: loop body
LE: loop exit
PB: predicated region body
PF: predicated region fallthrough
CT: control target
= control target key end

     0   :  { %10 = vsyncpa [#allocation3], 0  ;;  %s636_s0 = inlined_call_operand.hbm [shape: f32[8,128], index: 0, kind: input, shape index: {}]   ;;  %s637_s1 = inlined_call_operand.hbm [shape: f32[128,128], index: 1, kind: input, shape index: {}]   ;;  %s638_s2 = inlined_call_operand.vmem [shape: f32[1,128], index: 2, kind: input, shape index: {}]   ;;  %s639_s3 = inlined_call_operand.hbm [shape: f32[128,128], index: 3, kind: input, shape index: {}]   ;;  %s640_s4 = inlined_call_operand.vmem [shape: f32[1,128], index: 4, kind: input, shape index: {}]   ;;  %s641_s5 = inlined_call_operand.hbm [shape: f32[8,128], index: 5, kind: output, shape index: {}]  }
   0x1   :  { %11 = vsyncpa [#allocation6], 0 }
   0x2   :  { %12 = vsyncpa [#allocation4], 0  ;;  %s521_s18 = smov [#allocation5]   ;;  %s427_s22 = scalar_lea.hbm %s637_s1, 2048 }
   0x3   :  { %s28_s19 = sshll.u32 %s521_s18, 4  ;;  %p428_p0 = scmp.ne.s32.totalorder %s637_s1, %s427_s22  ;;  %s29_s19 = int_to_ptr.vmem [resolvable:$true] %s28_s19 }
   0x4   :  { %p431_p1 = scmp.lt.u32.totalorder %s427_s22, %s637_s1 }
   0x6   :  { %p433_p2 = pnand %p431_p1, %p428_p0 }
   0x8   :  { %436 = shalt.err (!%p433_p2)
}
   0x9   :  { %s437_s27 = scalar_lea.vmem %s29_s19, 2048  ;;  %p442_p4 = scmp.lt.s32.totalorder %s29_s19, %s29_s19 }
   0xa   :  { %p438_p3 = scmp.ne.s32.totalorder %s29_s19, %s437_s27  ;;  %p443_p5 = scmp.lt.s32.totalorder %s437_s27, %s437_s27 }
   0xc   :  { %p444_p6 = por %p443_p5, %p442_p4 }
   0xe   :  { %p445_p7 = pnand %p444_p6, %p438_p3 }
  0x10   :  { %448 = shalt.err (!%p445_p7)
}
  0x11   :  { %s522_s28 = smov 128   ;;  %s523_s29 = smov 8  }
  0x12   :  { %34 = dma.hbm_to_vmem [thread:$0]  %s637_s1, 2048, %s29_s19, [#allocation6], %s522_s28, %s522_s28, %s523_s29  }
  0x13   :  { %s524_s7 = smov [#allocation2]   ;;  %s525_s9 = smov [#allocation7]  }
  0x14   :  { %s19_s8 = sshll.u32 %s524_s7, 4  ;;  %s42_s10 = sshll.u32 %s525_s9, 4  ;;  %s20_s8 = int_to_ptr.vmem [resolvable:$true] %s19_s8  ;;  %s43_s10 = int_to_ptr.vmem [resolvable:$true] %s42_s10 }
  0x15   :  { %s449_s13 = scalar_lea.hbm %s636_s0, 128 }
  0x16   :  { %p450_p8 = scmp.ne.s32.totalorder %s636_s0, %s449_s13  ;;  %p453_p9 = scmp.lt.u32.totalorder %s449_s13, %s636_s0 }
  0x18   :  { %p455_p10 = pnand %p453_p9, %p450_p8 }
  0x1a   :  { %458 = shalt.err (!%p455_p10)
}
  0x1b   :  { %s459_s1 = scalar_lea.vmem %s20_s8, 128  ;;  %p464_p12 = scmp.lt.s32.totalorder %s20_s8, %s20_s8 }
  0x1c   :  { %p460_p11 = scmp.ne.s32.totalorder %s20_s8, %s459_s1  ;;  %p465_p13 = scmp.lt.s32.totalorder %s459_s1, %s459_s1 }
  0x1e   :  { %p466_p0 = por %p465_p13, %p464_p12 }
  0x20   :  { %p467_p1 = pnand %p466_p0, %p460_p11 }
  0x22   :  { %470 = shalt.err (!%p467_p1)
}
  0x23   :  { %22 = dma.hbm_to_vmem [thread:$0]  %s636_s0, 128, %s20_s8, [#allocation3]  }
  0x24   :  { %s471_s22 = scalar_lea.hbm %s639_s3, 2048 }
  0x25   :  { %p472_p2 = scmp.ne.s32.totalorder %s639_s3, %s471_s22  ;;  %p475_p3 = scmp.lt.u32.totalorder %s471_s22, %s639_s3 }
  0x27   :  { %p477_p4 = pnand %p475_p3, %p472_p2 }
  0x29   :  { %480 = shalt.err (!%p477_p4)
}
  0x2a   :  { %s481_s27 = scalar_lea.vmem %s43_s10, 2048  ;;  %p486_p6 = scmp.lt.s32.totalorder %s43_s10, %s43_s10 }
  0x2b   :  { %p482_p5 = scmp.ne.s32.totalorder %s43_s10, %s481_s27  ;;  %p487_p7 = scmp.lt.s32.totalorder %s481_s27, %s481_s27 }
  0x2d   :  { %p488_p8 = por %p487_p7, %p486_p6 }
  0x2f   :  { %p489_p9 = pnand %p488_p8, %p482_p5 }
  0x31   :  { %492 = shalt.err (!%p489_p9)
}
  0x32   :  { %48 = dma.hbm_to_vmem [thread:$0]  %s639_s3, 2048, %s43_s10, [#allocation6], %s522_s28, %s522_s28, %s523_s29  }
  0x33   :  { %515 = dma.done.wait [#allocation3], 128  }
  0x34   :  { %516 = vsyncadd [#allocation3], 4294967168 }
  0x35   :  { %517 = dma.done.wait [#allocation6], 4096  }
  0x36   :  { %518 = vsyncadd [#allocation6], 4294963200  ;;  %v526_v0 = vmov 0.0|0.0   ;;  %vm527_vm0 = vmmov 0   ;;  %v528_v1 = vmov 0.0   ;;  %v61_v2 = vld [vmem:[#allocation5] sm:$0xff] }
  0x37   :  { %370 = vmatprep.subr.bf16.mxu0 %v526_v0  ;;  %332 = vmatprep.mubr.msk.f32.mxu0 %vm527_vm0, %v528_v1  ;;  %v62_v3 = vld [vmem:[#allocation5 + $0x8] sm:$0xff]  ;;  %v63_v4 = vld [vmem:[#allocation5 + $0x10] sm:$0xff]  ;;  %v64_v6 = vld [vmem:[#allocation5 + $0x18] sm:$0xff]  ;;  %s529_s7 = smov [#allocation8]  }
  0x38   :  { %394 = vmatprep.subr.bf16.mxu1 %v526_v0  ;;  %367 = vmatprep.mubr.msk.f32.mxu1 %vm527_vm0, %v528_v1  ;;  %v371_v5 = vpack.c.bf16 %v62_v3, %v61_v2  ;;  %v374_v7 = vpack.c.bf16 %v64_v6, %v63_v4  ;;  %v65_v8 = vld [vmem:[#allocation5 + $0x20] sm:$0xff]  ;;  %v66_v9 = vld [vmem:[#allocation5 + $0x28] sm:$0xff]  ;;  %v156_v12 = vld [vmem:[#allocation7 + $0x10] sm:$0xff]  ;;  %s254_s8 = sshll.u32 %s529_s7, 4  ;;  %s255_s8 = int_to_ptr.vmem [resolvable:$true] %s254_s8 }
  0x39   :  { %v154_v10 = vld [vmem:[#allocation7] sm:$0xff]  ;;  %v155_v11 = vld [vmem:[#allocation7 + $0x8] sm:$0xff]  ;;  %v157_v13 = vld [vmem:[#allocation7 + $0x18] sm:$0xff]  ;;  %v377_v14 = vpack.c.bf16 %v66_v9, %v65_v8  ;;  %s493_s9 = scalar_lea.vmem %s255_s8, 128  ;;  %p498_p11 = scmp.lt.s32.totalorder %s255_s8, %s255_s8 }
  0x3a   :  { %372 = vmatpush3.bf16.msra.mxu0 %v371_v5  ;;  %v395_v15 = vpack.c.bf16 %v155_v11, %v154_v10  ;;  %v67_v16 = vld [vmem:[#allocation5 + $0x30] sm:$0xff]  ;;  %v68_v17 = vld [vmem:[#allocation5 + $0x38] sm:$0xff]  ;;  %v398_v18 = vpack.c.bf16 %v157_v13, %v156_v12  ;;  %v158_v19 = vld [vmem:[#allocation7 + $0x20] sm:$0xff]  ;;  %p494_p10 = scmp.ne.s32.totalorder %s255_s8, %s493_s9  ;;  %p499_p12 = scmp.lt.s32.totalorder %s493_s9, %s493_s9 }
  0x3b   :  { %373 = vmatprep.subr.bf16.mxu0 %v526_v0  ;;  %v159_v20 = vld [vmem:[#allocation7 + $0x28] sm:$0xff]  ;;  %v380_v21 = vpack.c.bf16 %v68_v17, %v67_v16  ;;  %v69_v22 = vld [vmem:[#allocation5 + $0x40] sm:$0xff]  ;;  %v160_v25 = vld [vmem:[#allocation7 + $0x30] sm:$0xff] }
  0x3c   :  { %396 = vmatpush3.bf16.msra.mxu1 %v395_v15  ;;  %v70_v23 = vld [vmem:[#allocation5 + $0x48] sm:$0xff]  ;;  %v401_v24 = vpack.c.bf16 %v159_v20, %v158_v19  ;;  %v161_v26 = vld [vmem:[#allocation7 + $0x38] sm:$0xff]  ;;  %v71_v28 = vld [vmem:[#allocation5 + $0x50] sm:$0xff]  ;;  %p500_p13 = por %p499_p12, %p498_p11 }
  0x3d   :  { %397 = vmatprep.subr.bf16.mxu1 %v526_v0  ;;  %v383_v27 = vpack.c.bf16 %v70_v23, %v69_v22  ;;  %v72_v29 = vld [vmem:[#allocation5 + $0x58] sm:$0xff]  ;;  %v404_v30 = vpack.c.bf16 %v161_v26, %v160_v25  ;;  %v162_v31 = vld [vmem:[#allocation7 + $0x40] sm:$0xff]  ;;  %v163_v32 = vld [vmem:[#allocation7 + $0x48] sm:$0xff] }
  0x3e   :  { %375 = vmatpush3.bf16.msra.mxu0 %v374_v7  ;;  %v386_v33 = vpack.c.bf16 %v72_v29, %v71_v28  ;;  %v73_v34 = vld [vmem:[#allocation5 + $0x60] sm:$0xff]  ;;  %v74_v35 = vld [vmem:[#allocation5 + $0x68] sm:$0xff]  ;;  %v407_v36 = vpack.c.bf16 %v163_v32, %v162_v31  ;;  %v164_v37 = vld [vmem:[#allocation7 + $0x50] sm:$0xff]  ;;  %p501_p0 = pnand %p500_p13, %p494_p10 }
  0x3f   :  { %376 = vmatprep.subr.bf16.mxu0 %v526_v0  ;;  %v165_v38 = vld [vmem:[#allocation7 + $0x58] sm:$0xff]  ;;  %v389_v39 = vpack.c.bf16 %v74_v35, %v73_v34  ;;  %v75_v40 = vld [vmem:[#allocation5 + $0x70] sm:$0xff]  ;;  %v166_v43 = vld [vmem:[#allocation7 + $0x60] sm:$0xff] }
  0x40   :  { %399 = vmatpush3.bf16.msra.mxu1 %v398_v18  ;;  %v76_v41 = vld [vmem:[#allocation5 + $0x78] sm:$0xff]  ;;  %v410_v42 = vpack.c.bf16 %v165_v38, %v164_v37  ;;  %v167_v44 = vld [vmem:[#allocation7 + $0x68] sm:$0xff]  ;;  %v168_v48 = vld [vmem:[#allocation7 + $0x70] sm:$0xff] }
  0x41   :  { %400 = vmatprep.subr.bf16.mxu1 %v526_v0  ;;  %v392_v45 = vpack.c.bf16 %v76_v41, %v75_v40  ;;  %v413_v46 = vpack.c.bf16 %v167_v44, %v166_v43  ;;  %v60_v47 = vld [vmem:[#allocation2] sm:$0xff] }
  0x42   :  { %378 = vmatpush3.bf16.msra.mxu0 %v377_v14  ;;  %v169_v49 = vld [vmem:[#allocation7 + $0x78] sm:$0xff] }
  0x43   :  { %379 = vmatprep.subr.bf16.mxu0 %v526_v0  ;;  %v416_v50 = vpack.c.bf16 %v169_v49, %v168_v48  ;;  %v264_v51 = vld [vmem:[%s638_s2] ss:$0 sm:$0xff] }
  0x44   :  { %402 = vmatpush3.bf16.msra.mxu1 %v401_v24  ;;  %v265_v55 = vld [vmem:[%s640_s4] ss:$0 sm:$0xff] }
  0x45   :  { %403 = vmatprep.subr.bf16.mxu1 %v526_v0 }
  0x46   :  { %381 = vmatpush3.bf16.msra.mxu0 %v380_v21 }
  0x47   :  { %382 = vmatprep.subr.bf16.mxu0 %v526_v0 }
  0x48   :  { %405 = vmatpush3.bf16.msra.mxu1 %v404_v30 }
  0x49   :  { %406 = vmatprep.subr.bf16.mxu1 %v526_v0 }
  0x4a   :  { %384 = vmatpush3.bf16.msra.mxu0 %v383_v27 }
  0x4b   :  { %385 = vmatprep.subr.bf16.mxu0 %v526_v0 }
  0x4c   :  { %408 = vmatpush3.bf16.msra.mxu1 %v407_v36 }
  0x4d   :  { %409 = vmatprep.subr.bf16.mxu1 %v526_v0 }
  0x4e   :  { %387 = vmatpush3.bf16.msra.mxu0 %v386_v33 }
  0x4f   :  { %388 = vmatprep.subr.bf16.mxu0 %v526_v0 }
  0x50   :  { %411 = vmatpush3.bf16.msra.mxu1 %v410_v42 }
  0x51   :  { %412 = vmatprep.subr.bf16.mxu1 %v526_v0 }
  0x52   :  { %390 = vmatpush3.bf16.msra.mxu0 %v389_v39 }
  0x53   :  { %391 = vmatprep.subr.bf16.mxu0 %v526_v0 }
  0x54   :  { %414 = vmatpush3.bf16.msra.mxu1 %v413_v46 }
  0x55   :  { %415 = vmatprep.subr.bf16.mxu1 %v526_v0 }
  0x56   :  { %393 = vmatpush3.bf16.msra.mxu0 %v392_v45 }
  0x58   :  { %417 = vmatpush3.bf16.msra.mxu1 %v416_v50 }
  0x59   :  { %333 = vmatmul.mubr.f32.vlgmr.msra.gmra.mrb[0].mxu0 %v60_v47 }
 0x12c   :  { %v150_v52 = vpop.f32.mrb[0].mxu0 }
 0x12d   :  { %v151_v53 = vadd.f32 %v264_v51, %v150_v52  ;;  %v334_v54 = vpop.f32.mrb[1].mxu0 }
 0x12f   :  { %368 = vmatmul.mubr.f32.vlgmr.msra.gmra.mrb[0].mxu1 %v151_v53 }
 0x202   :  { %v243_v56 = vpop.f32.mrb[0].mxu1 }
 0x203   :  { %v244_v57 = vadd.f32 %v265_v55, %v243_v56  ;;  %v369_v58 = vpop.f32.mrb[1].mxu1 }
 0x205   :  { %247 = vst [vmem:[#allocation8] sm:$0xff] %v244_v57 }
 0x206   :  { %504 = shalt.err (!%p501_p0)
}
 0x207   :  { %s505_s11 = scalar_lea.hbm %s641_s5, 128 }
 0x208   :  { %p506_p1 = scmp.ne.s32.totalorder %s641_s5, %s505_s11  ;;  %p509_p2 = scmp.lt.u32.totalorder %s505_s11, %s641_s5 }
 0x20a   :  { %p511_p3 = pnand %p509_p2, %p506_p1 }
 0x20c   :  { %514 = shalt.err (!%p511_p3)
}
 0x20d   :  { %257 = dma.vmem_to_hbm [thread:$0]  %s255_s8, 128, %s641_s5, [#allocation4]  }
 0x20e   :  { %519 = dma.done.wait [#allocation4], 128  }
 0x20f   :  { %520 = vsyncadd [#allocation4], 4294967168 }
 0x210   :  { %261 = vsyncpa [#allocation3], 1 }
 0x211   :  { %262 = vsyncpa [#allocation6], 1 }
 0x212   :  { %263 = vsyncpa [#allocation4], 1 }

</bundles_post_ra>
